<compile_context>
chip_gen: v7x
topology: tpu7x:2x2x1
jax: 0.10.0
libtpu: 0.0.40
codegen_flags: <defaults>
</compile_context>

<pallas_src>
import functools
import math

import jax
import jax.numpy as jnp
from jax.experimental import pallas as pl
from jax.experimental.pallas import tpu as pltpu


def _act_kernel(x_ref, wh_ref, bh_ref, wst_ref, bs_ref,
                prevh_ref, rem_ref, nup_ref, *, max_steps):
    # x_ref    : (TN, H) f32   token tile (hidden on the lane axis)
    # wh_ref   : (1, H)  f32   halting projection weight row
    # bh_ref   : (1, 1)  f32   halting projection bias
    # wst_ref  : (H, H)  bf16  step weight, pre-transposed (y = x @ wst + bs)
    # bs_ref   : (1, H)  f32   step bias
    # prevh_ref: (TN, H) f32   output previous_h
    # rem_ref  : (TN, 1) f32   output remainders
    # nup_ref  : (TN, 1) f32   output n_updates
    x = x_ref[...]
    wh = wh_ref[...]
    bh = bh_ref[...]          # (1, 1), broadcasts against (TN, 1)
    wst = wst_ref[...]
    bs = bs_ref[...]

    tn = x.shape[0]
    halting = jnp.zeros((tn, 1), jnp.float32)
    remainders = jnp.zeros((tn, 1), jnp.float32)
    n_updates = jnp.zeros((tn, 1), jnp.float32)
    prev_h = jnp.zeros_like(x)

    for step in range(max_steps):  # static unroll; max_computation_steps is small
        # halting probability: rank-1 projection -> VPU mul + one XLU lane reduce
        p = jax.nn.sigmoid(jnp.sum(x * wh, axis=-1, keepdims=True) + bh)  # (TN,1)

        still = (halting < 1.0).astype(jnp.float32)
        acc = halting + p * still
        new_halted = (acc > 1.0).astype(jnp.float32) * still
        still = (acc <= 1.0).astype(jnp.float32) * still

        halting = halting + p * still + new_halted
        remainders = remainders + new_halted * (1.0 - halting)
        n_updates = n_updates + still + new_halted
        update_w = p * still + new_halted

        # per-column reciprocal (TN elements) instead of a (TN, H) divide
        inv = pl.reciprocal(n_updates + 1e-10, approx=False)
        prev_h = (prev_h * n_updates + update_w * x) * inv

        if step < max_steps - 1:
            # x = step_function(x): bf16 MXU operands, f32 accumulation.
            # Skipped on the last step (its result is never read).
            x = jnp.dot(x.astype(wst.dtype), wst,
                        preferred_element_type=jnp.float32) + bs

    prevh_ref[...] = prev_h
    rem_ref[...] = remainders
    nup_ref[...] = n_updates


def adaptive_computation_time(x, w_halt, b_halt, w_step, b_step,
                              *, max_steps=3, token_tile=512,
                              mxu_dtype=jnp.bfloat16,
                              vmem_budget_bytes=48 * 1024 * 1024):
    """ACT forward.

    x: (B, S, H) f32
    w_halt: (1, H), b_halt: (1,)   halting_projections params (torch layout)
    w_step: (H, H), b_step: (H,)   step_function params (torch layout)
    returns (previous_h (B,S,H), remainders (B,S), n_updates (B,S))
    """
    B, S, H = x.shape
    N = B * S

    # Token tile: multiple of 8 sublanes, <= token_tile, and small enough that
    # the grid has at least 2 steps (so the "parallel" axis can use both v7x
    # TensorCores) whenever N allows.
    tn = min(token_tile, max(8, (((N + 1) // 2 + 7) // 8) * 8))

    # VMEM-aware clamp (conservative for v7x's 64 MiB physical VMEM):
    #   x + prev_h, double-buffered f32; step weight double-buffered mxu_dtype.
    w_itemsize = int(jnp.dtype(mxu_dtype).itemsize)
    weight_bytes = 2 * H * H * w_itemsize + 8 * H * 4      # wst (x2 bufs) + wh/bs/bh
    row_bytes = (2 + 2) * H * 4 + 6 * 4                    # x + prev_h (x2 bufs) + columns
    if weight_bytes < vmem_budget_bytes:
        max_tn = max(8, (((vmem_budget_bytes - weight_bytes) // row_bytes) // 8) * 8)
        tn = int(min(tn, max_tn))
    else:
        tn = 8  # TODO(synk): K-tile the step weight for very large H instead.

    grid = (N + tn - 1) // tn
    n_pad = grid * tn

    x2 = x.reshape(N, H).astype(jnp.float32)
    if n_pad != N:
        # Pad rows run the recurrence on zeros and are sliced off; only a perf
        # cost, never a correctness issue (rows are independent).
        x2 = jnp.pad(x2, ((0, n_pad - N), (0, 0)))

    # torch Linear is y = x @ W.T + b; transpose the step weight once here and
    # cast it to the MXU dtype (bf16 by default).
    # TODO(synk): in a real model, store/cache the step weight pre-transposed.
    wst = w_step.T.astype(mxu_dtype)               # (H, H)
    wh = w_halt.reshape(1, H).astype(jnp.float32)  # (1, H)
    bh = b_halt.reshape(1, 1).astype(jnp.float32)  # (1, 1)
    bs = b_step.reshape(1, H).astype(jnp.float32)  # (1, H)

    # Raise the scoped-VMEM limit enough for the chosen tile, stay under the
    # smallest physical VMEM (v7x 64 MiB) for safety.
    vmem_est = weight_bytes + tn * row_bytes + (2 << 20)
    vmem_limit = int(min(60 * 1024 * 1024, max(vmem_est, 32 * 1024 * 1024)))

    kernel = functools.partial(_act_kernel, max_steps=max_steps)

    prev_h, rem, nup = pl.pallas_call(
        kernel,
        grid=(grid,),
        in_specs=[
            pl.BlockSpec((tn, H), lambda i: (i, 0)),  # x tile (pipelined)
            pl.BlockSpec((1, H), lambda i: (0, 0)),   # w_halt (VMEM-resident)
            pl.BlockSpec((1, 1), lambda i: (0, 0)),   # b_halt
            pl.BlockSpec((H, H), lambda i: (0, 0)),   # w_step^T (VMEM-resident)
            pl.BlockSpec((1, H), lambda i: (0, 0)),   # b_step
        ],
        out_specs=(
            pl.BlockSpec((tn, H), lambda i: (i, 0)),  # previous_h (lane-dense)
            pl.BlockSpec((tn, 1), lambda i: (i, 0)),  # remainders
            pl.BlockSpec((tn, 1), lambda i: (i, 0)),  # n_updates
        ),
        out_shape=(
            jax.ShapeDtypeStruct((n_pad, H), jnp.float32),
            jax.ShapeDtypeStruct((n_pad, 1), jnp.float32),
            jax.ShapeDtypeStruct((n_pad, 1), jnp.float32),
        ),
        compiler_params=pltpu.CompilerParams(
            dimension_semantics=("parallel",),
            vmem_limit_bytes=vmem_limit),
    )(x2, wh, bh, wst, bs)

    previous_h = prev_h[:N].reshape(B, S, H)
    remainders = rem[:N, 0].reshape(B, S)
    n_updates = nup[:N, 0].reshape(B, S)
    return previous_h, remainders, n_updates


def _reference(x, w_halt, b_halt, w_step, b_step, max_steps, mxu_dtype):
    # Pure-JAX mirror of the PyTorch forward (including the early-exit check),
    # with the step matmul fed the same MXU dtype as the kernel so numerics
    # match; bookkeeping and accumulation stay f32.
    B, S, H = x.shape
    halting = jnp.zeros((B, S), jnp.float32)
    remainders = jnp.zeros((B, S), jnp.float32)
    n_updates = jnp.zeros((B, S), jnp.float32)
    prev_h = jnp.zeros_like(x)
    step = 0
    while step < max_steps and bool(jnp.any(halting < 1.0)):
        p = jax.nn.sigmoid(jnp.sum(x * w_halt.reshape(1, 1, H), axis=-1) + b_halt[0])
        still = (halting < 1.0).astype(jnp.float32)
        acc = halting + p * still
        new_halted = (acc > 1.0).astype(jnp.float32) * still
        still = (acc <= 1.0).astype(jnp.float32) * still
        halting = halting + p * still + new_halted
        remainders = remainders + new_halted * (1.0 - halting)
        n_updates = n_updates + still + new_halted
        uw = p * still + new_halted
        prev_h = (prev_h * n_updates[..., None] + uw[..., None] * x) / \
                 (n_updates + 1e-10)[..., None]
        x = jnp.einsum("bsh,oh->bso", x.astype(mxu_dtype), w_step.astype(mxu_dtype),
                       preferred_element_type=jnp.float32) + b_step
        step += 1
    return prev_h, remainders, n_updates


if __name__ == "__main__":
    B, S, H = 2, 8, 32
    MAX_STEPS = 3

    key = jax.random.PRNGKey(0)
    kx, kwh, kbh, kws, kbs = jax.random.split(key, 5)

    x = jax.random.normal(kx, (B, S, H), dtype=jnp.float32)
    # nn.Linear-style params (torch layout: weight (out, in), bias (out,))
    w_halt = jax.random.normal(kwh, (1, H), dtype=jnp.float32) / math.sqrt(H)
    b_halt = jax.random.normal(kbh, (1,), dtype=jnp.float32) * 0.1
    w_step = jax.random.normal(kws, (H, H), dtype=jnp.float32) / math.sqrt(H)
    b_step = jax.random.normal(kbs, (H,), dtype=jnp.float32) * 0.1

    prev_h, rem, nup = adaptive_computation_time(
        x, w_halt, b_halt, w_step, b_step, max_steps=MAX_STEPS)
    jax.block_until_ready((prev_h, rem, nup))

    ref_h, ref_rem, ref_nup = _reference(
        x, w_halt, b_halt, w_step, b_step, MAX_STEPS, jnp.bfloat16)

    assert prev_h.shape == (B, S, H)
    assert rem.shape == (B, S) and nup.shape == (B, S)
    assert bool(jnp.allclose(prev_h, ref_h, atol=1e-3, rtol=1e-3))
    assert bool(jnp.allclose(rem, ref_rem, atol=1e-3, rtol=1e-3))
    assert bool(jnp.allclose(nup, ref_nup, atol=1e-3, rtol=1e-3))

    print("KERNEL_OK")
</pallas_src>

<mosaic_0001>
module attributes {stable_mosaic.version = 11 : i64} {
  func.func @_act_kernel(%arg0: i32, %arg1: memref<8x32xf32, #tpu.memory_space<vmem>>, %arg2: memref<1x32xf32, #tpu.memory_space<vmem>>, %arg3: memref<1x1xf32, #tpu.memory_space<vmem>>, %arg4: memref<32x32xbf16, #tpu.memory_space<vmem>>, %arg5: memref<1x32xf32, #tpu.memory_space<vmem>>, %arg6: memref<8x32xf32, #tpu.memory_space<vmem>>, %arg7: memref<8x1xf32, #tpu.memory_space<vmem>>, %arg8: memref<8x1xf32, #tpu.memory_space<vmem>>) attributes {dimension_semantics = [#tpu.dimension_semantics<parallel>], iteration_bounds = array<i64: 2>, scalar_prefetch = 0 : i64, scratch_operands = 0 : i64, tpu.core_type = #tpu.core_type<tc>, window_params = [{transform_indices = @transform_0, window_bounds = array<i64: 8, 32>}, {pipeline_mode = #tpu.pipeline_mode<synchronous>, transform_indices = @transform_1, window_bounds = array<i64: 1, 32>}, {pipeline_mode = #tpu.pipeline_mode<synchronous>, transform_indices = @transform_2, window_bounds = array<i64: 1, 1>}, {pipeline_mode = #tpu.pipeline_mode<synchronous>, transform_indices = @transform_3, window_bounds = array<i64: 32, 32>}, {pipeline_mode = #tpu.pipeline_mode<synchronous>, transform_indices = @transform_4, window_bounds = array<i64: 1, 32>}, {transform_indices = @transform_5, window_bounds = array<i64: 8, 32>}, {transform_indices = @transform_6, window_bounds = array<i64: 8, 1>}, {transform_indices = @transform_7, window_bounds = array<i64: 8, 1>}]} {
    %c0 = arith.constant 0 : index
    %c0_0 = arith.constant 0 : index
    %0 = vector.load %arg1[%c0, %c0_0] : memref<8x32xf32, #tpu.memory_space<vmem>>, vector<8x32xf32>
    %c0_1 = arith.constant 0 : index
    %c0_2 = arith.constant 0 : index
    %1 = vector.load %arg2[%c0_1, %c0_2] : memref<1x32xf32, #tpu.memory_space<vmem>>, vector<1x32xf32>
    %c0_3 = arith.constant 0 : index
    %c0_4 = arith.constant 0 : index
    %2 = vector.load %arg3[%c0_3, %c0_4] : memref<1x1xf32, #tpu.memory_space<vmem>>, vector<1x1xf32>
    %c0_5 = arith.constant 0 : index
    %c0_6 = arith.constant 0 : index
    %3 = vector.load %arg4[%c0_5, %c0_6] : memref<32x32xbf16, #tpu.memory_space<vmem>>, vector<32x32xbf16>
    %c0_7 = arith.constant 0 : index
    %c0_8 = arith.constant 0 : index
    %4 = vector.load %arg5[%c0_7, %c0_8] : memref<1x32xf32, #tpu.memory_space<vmem>>, vector<1x32xf32>
    %cst = arith.constant 0.000000e+00 : f32
    %5 = vector.broadcast %cst : f32 to vector<8x1xf32>
    %cst_9 = arith.constant 0.000000e+00 : f32
    %6 = vector.broadcast %cst_9 : f32 to vector<8x1xf32>
    %cst_10 = arith.constant 0.000000e+00 : f32
    %7 = vector.broadcast %cst_10 : f32 to vector<8x1xf32>
    %cst_11 = arith.constant 0.000000e+00 : f32
    %8 = vector.broadcast %cst_11 : f32 to vector<8x32xf32>
    %9 = vector.broadcast %1 : vector<1x32xf32> to vector<8x32xf32>
    %10 = arith.mulf %0, %9 : vector<8x32xf32>
    %cst_12 = arith.constant dense<0.000000e+00> : vector<8xf32>
    %11 = vector.multi_reduction <add>, %10, %cst_12 [1] : vector<8x32xf32> to vector<8xf32>
    %12 = vector.shape_cast %11 : vector<8xf32> to vector<8x1xf32>
    %13 = vector.broadcast %2 : vector<1x1xf32> to vector<8x1xf32>
    %14 = arith.addf %12, %13 : vector<8x1xf32>
    %15 = arith.negf %14 : vector<8x1xf32>
    %16 = math.exp %15 : vector<8x1xf32>
    %cst_13 = arith.constant 1.000000e+00 : f32
    %17 = vector.broadcast %cst_13 : f32 to vector<8x1xf32>
    %18 = arith.addf %17, %16 : vector<8x1xf32>
    %19 = arith.divf %17, %18 : vector<8x1xf32>
    %cst_14 = arith.constant 1.000000e+00 : f32
    %20 = vector.broadcast %cst_14 : f32 to vector<8x1xf32>
    %21 = arith.cmpf olt, %5, %20 : vector<8x1xf32>
    %22 = arith.extui %21 : vector<8x1xi1> to vector<8x1xi32>
    %23 = arith.sitofp %22 : vector<8x1xi32> to vector<8x1xf32>
    %24 = arith.mulf %19, %23 : vector<8x1xf32>
    %25 = arith.addf %5, %24 : vector<8x1xf32>
    %cst_15 = arith.constant 1.000000e+00 : f32
    %26 = vector.broadcast %cst_15 : f32 to vector<8x1xf32>
    %27 = arith.cmpf ogt, %25, %26 : vector<8x1xf32>
    %28 = arith.extui %27 : vector<8x1xi1> to vector<8x1xi32>
    %29 = arith.sitofp %28 : vector<8x1xi32> to vector<8x1xf32>
    %30 = arith.mulf %29, %23 : vector<8x1xf32>
    %cst_16 = arith.constant 1.000000e+00 : f32
    %31 = vector.broadcast %cst_16 : f32 to vector<8x1xf32>
    %32 = arith.cmpf ole, %25, %31 : vector<8x1xf32>
    %33 = arith.extui %32 : vector<8x1xi1> to vector<8x1xi32>
    %34 = arith.sitofp %33 : vector<8x1xi32> to vector<8x1xf32>
    %35 = arith.mulf %34, %23 : vector<8x1xf32>
    %36 = arith.mulf %19, %35 : vector<8x1xf32>
    %37 = arith.addf %5, %36 : vector<8x1xf32>
    %38 = arith.addf %37, %30 : vector<8x1xf32>
    %cst_17 = arith.constant 1.000000e+00 : f32
    %39 = vector.broadcast %cst_17 : f32 to vector<8x1xf32>
    %40 = arith.subf %39, %38 : vector<8x1xf32>
    %41 = arith.mulf %30, %40 : vector<8x1xf32>
    %42 = arith.addf %6, %41 : vector<8x1xf32>
    %43 = arith.addf %7, %35 : vector<8x1xf32>
    %44 = arith.addf %43, %30 : vector<8x1xf32>
    %45 = arith.mulf %19, %35 : vector<8x1xf32>
    %46 = arith.addf %45, %30 : vector<8x1xf32>
    %cst_18 = arith.constant 1.000000e-10 : f32
    %47 = vector.broadcast %cst_18 : f32 to vector<8x1xf32>
    %48 = arith.addf %44, %47 : vector<8x1xf32>
    %49 = tpu.reciprocal %48 : vector<8x1xf32> -> vector<8x1xf32>
    %50 = vector.broadcast %44 : vector<8x1xf32> to vector<8x32xf32>
    %51 = arith.mulf %8, %50 : vector<8x32xf32>
    %52 = vector.broadcast %46 : vector<8x1xf32> to vector<8x32xf32>
    %53 = arith.mulf %52, %0 : vector<8x32xf32>
    %54 = arith.addf %51, %53 : vector<8x32xf32>
    %55 = vector.broadcast %49 : vector<8x1xf32> to vector<8x32xf32>
    %56 = arith.mulf %54, %55 : vector<8x32xf32>
    %57 = arith.truncf %0 : vector<8x32xf32> to vector<8x32xbf16>
    %cst_19 = arith.constant dense<0.000000e+00> : vector<8x32xf32>
    %58 = tpu.matmul %57, %3, %cst_19 {dimension_numbers = #tpu.dot_dimension_numbers<[1], [0], [0], [1], [0, 0, 1, 1], [], []>} : vector<8x32xbf16>, vector<32x32xbf16>, vector<8x32xf32> -> vector<8x32xf32>
    %59 = vector.broadcast %4 : vector<1x32xf32> to vector<8x32xf32>
    %60 = arith.addf %58, %59 : vector<8x32xf32>
    %61 = vector.broadcast %1 : vector<1x32xf32> to vector<8x32xf32>
    %62 = arith.mulf %60, %61 : vector<8x32xf32>
    %cst_20 = arith.constant dense<0.000000e+00> : vector<8xf32>
    %63 = vector.multi_reduction <add>, %62, %cst_20 [1] : vector<8x32xf32> to vector<8xf32>
    %64 = vector.shape_cast %63 : vector<8xf32> to vector<8x1xf32>
    %65 = vector.broadcast %2 : vector<1x1xf32> to vector<8x1xf32>
    %66 = arith.addf %64, %65 : vector<8x1xf32>
    %67 = arith.negf %66 : vector<8x1xf32>
    %68 = math.exp %67 : vector<8x1xf32>
    %cst_21 = arith.constant 1.000000e+00 : f32
    %69 = vector.broadcast %cst_21 : f32 to vector<8x1xf32>
    %70 = arith.addf %69, %68 : vector<8x1xf32>
    %71 = arith.divf %69, %70 : vector<8x1xf32>
    %cst_22 = arith.constant 1.000000e+00 : f32
    %72 = vector.broadcast %cst_22 : f32 to vector<8x1xf32>
    %73 = arith.cmpf olt, %38, %72 : vector<8x1xf32>
    %74 = arith.extui %73 : vector<8x1xi1> to vector<8x1xi32>
    %75 = arith.sitofp %74 : vector<8x1xi32> to vector<8x1xf32>
    %76 = arith.mulf %71, %75 : vector<8x1xf32>
    %77 = arith.addf %38, %76 : vector<8x1xf32>
    %cst_23 = arith.constant 1.000000e+00 : f32
    %78 = vector.broadcast %cst_23 : f32 to vector<8x1xf32>
    %79 = arith.cmpf ogt, %77, %78 : vector<8x1xf32>
    %80 = arith.extui %79 : vector<8x1xi1> to vector<8x1xi32>
    %81 = arith.sitofp %80 : vector<8x1xi32> to vector<8x1xf32>
    %82 = arith.mulf %81, %75 : vector<8x1xf32>
    %cst_24 = arith.constant 1.000000e+00 : f32
    %83 = vector.broadcast %cst_24 : f32 to vector<8x1xf32>
    %84 = arith.cmpf ole, %77, %83 : vector<8x1xf32>
    %85 = arith.extui %84 : vector<8x1xi1> to vector<8x1xi32>
    %86 = arith.sitofp %85 : vector<8x1xi32> to vector<8x1xf32>
    %87 = arith.mulf %86, %75 : vector<8x1xf32>
    %88 = arith.mulf %71, %87 : vector<8x1xf32>
    %89 = arith.addf %38, %88 : vector<8x1xf32>
    %90 = arith.addf %89, %82 : vector<8x1xf32>
    %cst_25 = arith.constant 1.000000e+00 : f32
    %91 = vector.broadcast %cst_25 : f32 to vector<8x1xf32>
    %92 = arith.subf %91, %90 : vector<8x1xf32>
    %93 = arith.mulf %82, %92 : vector<8x1xf32>
    %94 = arith.addf %42, %93 : vector<8x1xf32>
    %95 = arith.addf %44, %87 : vector<8x1xf32>
    %96 = arith.addf %95, %82 : vector<8x1xf32>
    %97 = arith.mulf %71, %87 : vector<8x1xf32>
    %98 = arith.addf %97, %82 : vector<8x1xf32>
    %cst_26 = arith.constant 1.000000e-10 : f32
    %99 = vector.broadcast %cst_26 : f32 to vector<8x1xf32>
    %100 = arith.addf %96, %99 : vector<8x1xf32>
    %101 = tpu.reciprocal %100 : vector<8x1xf32> -> vector<8x1xf32>
    %102 = vector.broadcast %96 : vector<8x1xf32> to vector<8x32xf32>
    %103 = arith.mulf %56, %102 : vector<8x32xf32>
    %104 = vector.broadcast %98 : vector<8x1xf32> to vector<8x32xf32>
    %105 = arith.mulf %104, %60 : vector<8x32xf32>
    %106 = arith.addf %103, %105 : vector<8x32xf32>
    %107 = vector.broadcast %101 : vector<8x1xf32> to vector<8x32xf32>
    %108 = arith.mulf %106, %107 : vector<8x32xf32>
    %109 = arith.truncf %60 : vector<8x32xf32> to vector<8x32xbf16>
    %cst_27 = arith.constant dense<0.000000e+00> : vector<8x32xf32>
    %110 = tpu.matmul %109, %3, %cst_27 {dimension_numbers = #tpu.dot_dimension_numbers<[1], [0], [0], [1], [0, 0, 1, 1], [], []>} : vector<8x32xbf16>, vector<32x32xbf16>, vector<8x32xf32> -> vector<8x32xf32>
    %111 = vector.broadcast %4 : vector<1x32xf32> to vector<8x32xf32>
    %112 = arith.addf %110, %111 : vector<8x32xf32>
    %113 = vector.broadcast %1 : vector<1x32xf32> to vector<8x32xf32>
    %114 = arith.mulf %112, %113 : vector<8x32xf32>
    %cst_28 = arith.constant dense<0.000000e+00> : vector<8xf32>
    %115 = vector.multi_reduction <add>, %114, %cst_28 [1] : vector<8x32xf32> to vector<8xf32>
    %116 = vector.shape_cast %115 : vector<8xf32> to vector<8x1xf32>
    %117 = vector.broadcast %2 : vector<1x1xf32> to vector<8x1xf32>
    %118 = arith.addf %116, %117 : vector<8x1xf32>
    %119 = arith.negf %118 : vector<8x1xf32>
    %120 = math.exp %119 : vector<8x1xf32>
    %cst_29 = arith.constant 1.000000e+00 : f32
    %121 = vector.broadcast %cst_29 : f32 to vector<8x1xf32>
    %122 = arith.addf %121, %120 : vector<8x1xf32>
    %123 = arith.divf %121, %122 : vector<8x1xf32>
    %cst_30 = arith.constant 1.000000e+00 : f32
    %124 = vector.broadcast %cst_30 : f32 to vector<8x1xf32>
    %125 = arith.cmpf olt, %90, %124 : vector<8x1xf32>
    %126 = arith.extui %125 : vector<8x1xi1> to vector<8x1xi32>
    %127 = arith.sitofp %126 : vector<8x1xi32> to vector<8x1xf32>
    %128 = arith.mulf %123, %127 : vector<8x1xf32>
    %129 = arith.addf %90, %128 : vector<8x1xf32>
    %cst_31 = arith.constant 1.000000e+00 : f32
    %130 = vector.broadcast %cst_31 : f32 to vector<8x1xf32>
    %131 = arith.cmpf ogt, %129, %130 : vector<8x1xf32>
    %132 = arith.extui %131 : vector<8x1xi1> to vector<8x1xi32>
    %133 = arith.sitofp %132 : vector<8x1xi32> to vector<8x1xf32>
    %134 = arith.mulf %133, %127 : vector<8x1xf32>
    %cst_32 = arith.constant 1.000000e+00 : f32
    %135 = vector.broadcast %cst_32 : f32 to vector<8x1xf32>
    %136 = arith.cmpf ole, %129, %135 : vector<8x1xf32>
    %137 = arith.extui %136 : vector<8x1xi1> to vector<8x1xi32>
    %138 = arith.sitofp %137 : vector<8x1xi32> to vector<8x1xf32>
    %139 = arith.mulf %138, %127 : vector<8x1xf32>
    %140 = arith.mulf %123, %139 : vector<8x1xf32>
    %141 = arith.addf %90, %140 : vector<8x1xf32>
    %142 = arith.addf %141, %134 : vector<8x1xf32>
    %cst_33 = arith.constant 1.000000e+00 : f32
    %143 = vector.broadcast %cst_33 : f32 to vector<8x1xf32>
    %144 = arith.subf %143, %142 : vector<8x1xf32>
    %145 = arith.mulf %134, %144 : vector<8x1xf32>
    %146 = arith.addf %94, %145 : vector<8x1xf32>
    %147 = arith.addf %96, %139 : vector<8x1xf32>
    %148 = arith.addf %147, %134 : vector<8x1xf32>
    %149 = arith.mulf %123, %139 : vector<8x1xf32>
    %150 = arith.addf %149, %134 : vector<8x1xf32>
    %cst_34 = arith.constant 1.000000e-10 : f32
    %151 = vector.broadcast %cst_34 : f32 to vector<8x1xf32>
    %152 = arith.addf %148, %151 : vector<8x1xf32>
    %153 = tpu.reciprocal %152 : vector<8x1xf32> -> vector<8x1xf32>
    %154 = vector.broadcast %148 : vector<8x1xf32> to vector<8x32xf32>
    %155 = arith.mulf %108, %154 : vector<8x32xf32>
    %156 = vector.broadcast %150 : vector<8x1xf32> to vector<8x32xf32>
    %157 = arith.mulf %156, %112 : vector<8x32xf32>
    %158 = arith.addf %155, %157 : vector<8x32xf32>
    %159 = vector.broadcast %153 : vector<8x1xf32> to vector<8x32xf32>
    %160 = arith.mulf %158, %159 : vector<8x32xf32>
    %c0_35 = arith.constant 0 : index
    %c0_36 = arith.constant 0 : index
    %161 = vector.load %arg6[%c0_35, %c0_36] : memref<8x32xf32, #tpu.memory_space<vmem>>, vector<8x32xf32>
    tpu.vector_store %arg6[%c0_35, %c0_36], %160 {strides = array<i32>} : memref<8x32xf32, #tpu.memory_space<vmem>>, vector<8x32xf32>,
    %c0_37 = arith.constant 0 : index
    %c0_38 = arith.constant 0 : index
    %162 = vector.load %arg7[%c0_37, %c0_38] : memref<8x1xf32, #tpu.memory_space<vmem>>, vector<8x1xf32>
    tpu.vector_store %arg7[%c0_37, %c0_38], %146 {strides = array<i32>} : memref<8x1xf32, #tpu.memory_space<vmem>>, vector<8x1xf32>,
    %c0_39 = arith.constant 0 : index
    %c0_40 = arith.constant 0 : index
    %163 = vector.load %arg8[%c0_39, %c0_40] : memref<8x1xf32, #tpu.memory_space<vmem>>, vector<8x1xf32>
    tpu.vector_store %arg8[%c0_39, %c0_40], %148 {strides = array<i32>} : memref<8x1xf32, #tpu.memory_space<vmem>>, vector<8x1xf32>,
    return
  }
  func.func @transform_0(%arg0: i32) -> (i32, i32) {
    %c0_i32 = arith.constant 0 : i32
    %c0_i32_0 = arith.constant 0 : i32
    return %arg0, %c0_i32 : i32, i32
  }
  func.func @transform_1(%arg0: i32) -> (i32, i32) {
    %c0_i32 = arith.constant 0 : i32
    %c0_i32_0 = arith.constant 0 : i32
    %c0_i32_1 = arith.constant 0 : i32
    return %c0_i32, %c0_i32_0 : i32, i32
  }
  func.func @transform_2(%arg0: i32) -> (i32, i32) {
    %c0_i32 = arith.constant 0 : i32
    %c0_i32_0 = arith.constant 0 : i32
    %c0_i32_1 = arith.constant 0 : i32
    return %c0_i32, %c0_i32_0 : i32, i32
  }
  func.func @transform_3(%arg0: i32) -> (i32, i32) {
    %c0_i32 = arith.constant 0 : i32
    %c0_i32_0 = arith.constant 0 : i32
    %c0_i32_1 = arith.constant 0 : i32
    return %c0_i32, %c0_i32_0 : i32, i32
  }
  func.func @transform_4(%arg0: i32) -> (i32, i32) {
    %c0_i32 = arith.constant 0 : i32
    %c0_i32_0 = arith.constant 0 : i32
    %c0_i32_1 = arith.constant 0 : i32
    return %c0_i32, %c0_i32_0 : i32, i32
  }
  func.func @transform_5(%arg0: i32) -> (i32, i32) {
    %c0_i32 = arith.constant 0 : i32
    %c0_i32_0 = arith.constant 0 : i32
    return %arg0, %c0_i32 : i32, i32
  }
  func.func @transform_6(%arg0: i32) -> (i32, i32) {
    %c0_i32 = arith.constant 0 : i32
    %c0_i32_0 = arith.constant 0 : i32
    return %arg0, %c0_i32 : i32, i32
  }
  func.func @transform_7(%arg0: i32) -> (i32, i32) {
    %c0_i32 = arith.constant 0 : i32
    %c0_i32_0 = arith.constant 0 : i32
    return %arg0, %c0_i32 : i32, i32
  }
}

</mosaic_0001>

<bundles_post_ra>
// kernel: tpu_custom_call.1
= control target key start
LH: loop header
LB: loop body
LE: loop exit
PB: predicated region body
PF: predicated region fallthrough
CT: control target
= control target key end

     0   :  { %s1363_s0 = inlined_call_operand.hbm [shape: f32[16,32], index: 0, kind: input, shape index: {}]   ;;  %s1364_s1 = inlined_call_operand.vmem [shape: f32[1,32], index: 1, kind: input, shape index: {}]   ;;  %s1365_s2 = inlined_call_operand.<no memory space> [shape: f32[1,1], index: 2, kind: input, shape index: {}]   ;;  %s1366_s3 = inlined_call_operand.hbm [shape: bf16[32,32], index: 3, kind: input, shape index: {}]   ;;  %s1367_s4 = inlined_call_operand.vmem [shape: f32[1,32], index: 4, kind: input, shape index: {}]   ;;  %s1368_s5 = inlined_call_operand.hbm [shape: f32[16,32], index: 5, kind: output, shape index: {0}]   ;;  %s1369_s6 = inlined_call_operand.vmem [shape: f32[16,1], index: 6, kind: output, shape index: {1}]   ;;  %s1370_s7 = inlined_call_operand.vmem [shape: f32[16,1], index: 7, kind: output, shape index: {2}]  }
   0x1   :  { %v13_v0 = vstv %s1365_s2 }
   0x2   :  { %14 = vst [vmem:[#allocation2] sm:$0x1] %v13_v0 }
   0x3   :  { %15 = vsyncpa [#allocation4], 0 }
   0x4   :  { %17 = vsyncpa [#allocation4 + $0x1], 0 }
   0x5   :  { %18 = vsyncpa [#allocation7], 0 }
   0x6   :  { %19 = vsyncpa [#allocation5], 0 }
   0x7   :  { %21 = vsyncpa [#allocation5 + $0x1], 0  ;;  %s1103_s26 = smov 0   ;;  %s1105_s27 = smov 0  }
   0x8   :  { %s1107_s28 = smov 0   ;;  %s1109_s29 = smov 0  }
   0x9 LB: > { %s1124_s2 = sadd.s32 4294967295, %s1050_s29   ;;  %s782_s30 = sadd.s32 4294967294, %s1050_s29   ;;  %s1050_s29 = sphi %s1109_s29, %s1390_s29   ;;  %s1046_s28 = sphi %s1107_s28, %s1389_s28   ;;  %s1042_s27 = sphi %s1105_s27, %s1388_s27   ;;  %s1038_s26 = sphi %s1103_s26, %s1387_s26  }
   0xa   : > { %p47_p0 = scmp.ne.s32.totalorder %s1042_s27, %s1038_s26  ;;  %p1371_p1 = scmp.eq.s32.totalorder %s1124_s2, 0 }
   0xb   : > { %p161_p3 = scmp.eq.s32.totalorder %s782_s30, 1  ;;  %p783_p5 = scmp.ge.s32.totalorder %s1050_s29, 1 }
   0xc   : > { %p1133_p4 = por %p1371_p1, %p47_p0  ;;  %p220_p7 = scmp.lt.s32.totalorder %s1050_s29, 3 }
   0xd   : > { %p1138_p6 = por %p161_p3, %p47_p0  ;;  %s1052_s11 = smov [#allocation6]  }
   0xe   : > { %s1374_s8 = scalar_select %p1133_p4, 1, 0 }
   0xf   : > { %s1375_s9 = scalar_select %p1138_p6, 1, 0 }
  0x10   : > { %p1143_p8 = pnand %p783_p5, %p220_p7  ;;  %s238_s12 = sshll.u32 %s1052_s11, 4  ;;  %s1147_s12 = int_to_ptr.vmem [resolvable:$true] %s238_s12 }
  0x11   : > { %s1159_s14 = sadd.s32 1, %s1050_s29   ;;  %s34_s15 = sadd.s32 1, %s1046_s28 }
  0x12   : > { %s1376_s10 = scalar_select %p1143_p8, 1, 0 }
  0x13   : > { %p846_p9 = pneg %p1143_p8  ;;  %s31_s16 = ssub.s32 %s1050_s29, %s1159_s14 }
  0x14   : > { %s922_s19 = scalar_lea.hbm %s1366_s3, 256 }
  0x15   : > { %p1154_p11 = pnand %p846_p9, %p1371_p1  ;;  %p923_p12 = scmp.ne.s32.totalorder %s1366_s3, %s922_s19 }
  0x16   : > { %p929_p5 = scmp.lt.u32.totalorder %s922_s19, %s1366_s3 }
  0x17   : > { %p924_p13 = pneg %p1154_p11 }
  0x19   : > { %p925_p0 = pnand %p924_p13, %p923_p12 }
  0x1b   : > { %p926_p3 = pneg %p925_p0 }
  0x1d   : > { %p931_p7 = pnand %p929_p5, %p926_p3 }
  0x1f   : > { %934 = shalt.err (!%p931_p7)
}
  0x20   : > { %s935_s24 = scalar_lea.vmem %s1147_s12, 256  ;;  %p943_p2 = scmp.lt.s32.totalorder %s1147_s12, %s1147_s12 }
  0x21   : > { %p936_p9 = scmp.ne.s32.totalorder %s1147_s12, %s935_s24  ;;  %p944_p6 = scmp.lt.s32.totalorder %s935_s24, %s935_s24 }
  0x23   : > { %p938_p10 = pnand %p936_p9, %p924_p13  ;;  %p945_p4 = por %p944_p6, %p943_p2 }
  0x25   : > { %p939_p1 = pneg %p938_p10 }
  0x27   : > { %p946_p8 = pnand %p945_p4, %p939_p1 }
  0x29   : > { %949 = shalt.err (!%p946_p8)
}
  0x2a   : > { %s1053_s25 = smov 64   ;;  %s1054_s30 = smov 4  }
  0x2b   : > { %849 = dma.hbm_to_vmem [thread:$0]  (!%p1154_p11), %s1366_s3, 256, %s1147_s12, [#allocation7], %s1053_s25, %s1053_s25, %s1054_s30  }
  0x2c   : > { %p32_p2 = scmp.eq.s32.totalorder %s31_s16, 0  ;;  %p41_p1 = scmp.ne.s32.totalorder %s1046_s28, %s1042_s27 }
  0x2d   : > { %p42_p4 = scmp.eq.s32.totalorder %s1050_s29, 0  ;;  %p859_p6 = scmp.lt.s32.totalorder %s1050_s29, 2 }
  0x2e   : > { %s1190_s18 = scalar_select %p32_p2, %s1046_s28, %s34_s15  }
  0x2f   : > { %p43_p8 = por %p42_p4, %p41_p1  ;;  %p1378_p10 = scmp.eq.s32.totalorder %s1124_s2, 1 }
  0x30   : > { %s255_s20 = sand.u32 1, %s1046_s28   ;;  %s787_s21 = sshll.u32 %s1050_s29, 7 }
  0x31   : > { %p1194_p12 = por %p1378_p10, %p41_p1  ;;  %s786_s22 = sshll.u32 %s255_s20, 3 }
  0x32   : > { %s1203_s24 = scalar_lea.hbm %s1363_s0, %s787_s21  ;;  %s259_s12 = scalar_lea.vmem [#allocation3], %s786_s22 }
  0x33   : > { %s266_s15 = sshll.u32 %s259_s12, 4  ;;  %p1205_p11 = pnand %p859_p6, %p43_p8  ;;  %s1209_s15 = int_to_ptr.vmem [resolvable:$true] %s266_s15 }
  0x34   : > { %s256_s25 = scalar_lea.sflag [#allocation4], %s255_s20  ;;  %s950_s30 = scalar_lea.hbm %s1203_s24, 128 }
  0x35   : > { %p951_p13 = scmp.ne.s32.totalorder %s1203_s24, %s950_s30  ;;  %p952_p0 = pneg %p1205_p11 }
  0x36   : > { %s955_s21 = scalar_lea.hbm %s1363_s0, 256  ;;  %p956_p7 = scmp.lt.u32.totalorder %s1203_s24, %s1363_s0 }
  0x37   : > { %p953_p3 = pnand %p952_p0, %p951_p13  ;;  %p957_p9 = scmp.lt.u32.totalorder %s955_s21, %s950_s30 }
  0x38   : > { %p959_p1 = scmp.lt.u32.totalorder %s950_s30, %s1203_s24 }
  0x39   : > { %p954_p5 = pneg %p953_p3  ;;  %p958_p2 = por %p957_p9, %p956_p7 }
  0x3b   : > { %p960_p4 = por %p959_p1, %p958_p2 }
  0x3d   : > { %p961_p6 = pnand %p960_p4, %p954_p5 }
  0x3f   : > { %964 = shalt.err (!%p961_p6)
}
  0x40   : > { %s965_s20 = scalar_lea.vmem %s1209_s15, 128  ;;  %s1055_s23 = smov [#allocation3]  }
  0x41   : > { %p966_p8 = scmp.ne.s32.totalorder %s1209_s15, %s965_s20  ;;  %s970_s12 = sshll.u32 %s1055_s23, 4  ;;  %s971_s12 = int_to_ptr.vmem [resolvable:$false] %s970_s12 }
  0x42   : > { %s972_s11 = scalar_lea.vmem %s971_s12, 256  ;;  %p973_p3 = scmp.lt.s32.totalorder %s1209_s15, %s971_s12 }
  0x43   : > { %p968_p10 = pnand %p966_p8, %p952_p0  ;;  %p974_p7 = scmp.lt.s32.totalorder %s972_s11, %s965_s20 }
  0x45   : > { %p969_p13 = pneg %p968_p10  ;;  %p975_p9 = por %p974_p7, %p973_p3 }
  0x47   : > { %p976_p2 = pnand %p975_p9, %p969_p13 }
  0x49   : > { %979 = shalt.err (!%p976_p2)
}
  0x4a   : > { %853 = dma.hbm_to_vmem [thread:$0]  (!%p1205_p11), %s1203_s24, 128, %s1209_s15, %s256_s25  }
  0x4b   : > { %p1381_p5 = scmp.ne.s32.totalorder %s1376_s10, 0 }
  0x4c   : > { %s1239_s30 = sand.u32 (!%p1381_p5), 1, %s1042_s27   ;;  %p1382_p0 = scmp.ne.s32.totalorder (!%p1381_p5), %s1374_s8, 0 }
  0x4d   : > { %275 = sbr.rel (%p1381_p5) target bundleno = 870 (0x366), region = 40  ;;  %s789_s17 = sshll.u32 (!%p1381_p5), %s1239_s30, 3 }
  0x4e   : > { %s278_s21 = scalar_lea.sflag (!%p1381_p5), [#allocation4], %s1239_s30  ;;  %s281_s22 = scalar_lea.vmem (!%p1381_p5), [#allocation3], %s789_s17 }
  0x54   : > { %1025 = dma.done.wait (%p1382_p0), %s278_s21, 128  }
  0x55   : > { %1027 = vsyncadd (%p1382_p0), %s278_s21, 4294967168  ;;  %p1383_p11 = scmp.eq.s32.totalorder %s1124_s2, 0 }
  0x57   : > { %1029 = dma.done.wait (%p1383_p11), [#allocation7], 256   ;;  %p1384_p1 = pmov %p1383_p11 }
  0x58   : > { %v1056_v1 = vmov 0.0   ;;  %vm1057_vm0 = vmmov 0   ;;  %v902_v2 = vld [vmem:[#allocation6] sm:$0xff]   ;;  %v903_v3 = vld [vmem:[#allocation6 + $0x8] sm:$0xff]   ;;  %v1257_v4 = vld [vmem:[%s281_s22] sm:$0xff]  ;;  %vm348_vm1 = vcmask 261120  }
  0x59   : > { %1031 = vsyncadd (%p1384_p1), [#allocation7], 4294967040  ;;  %822 = vmatprep.subr.bf16.mxu0 %v1056_v1  ;;  %826 = vmatprep.mubr.msk.bf16.mxu0 %vm1057_vm0, %v1056_v1  ;;  %v1262_v5 = vld [vmem:[%s1364_s1] ss:$0 sm:$0xff]  ;;  %v408_v7 = vpack.c.bf16 %v1257_v4, %v1257_v4  ;;  %v1058_v30 = vmov 0   ;;  %p324_p4 = scmp.lt.s32.totalorder %s1124_s2, 1 }
  0x5a   : > { %830 = vmatprep.subr.bf16.mxu1 %v1056_v1  ;;  %834 = vmatprep.mubr.msk.bf16.mxu1 %vm1057_vm0, %v1056_v1  ;;  %v347_v6 = vmul.f32 %v1262_v5, %v1257_v4  ;;  %v799_v9 = vld [vmem:[%s1367_s4] ss:$0 sm:$0xff]  ;;  %vm623_vm10 = vcmask 7168   ;;  %s813_s22 = sshll.u32 %s1124_s2, 7  ;;  %s311_s8 = scalar_lea.vmem [#allocation8], %s789_s17 }
  0x5b   : > { %823 = vmatpush3.bf16.msra.mxu0 %v902_v2  ;;  %831 = vmatpush3.bf16.msra.mxu1 %v902_v2  ;;  %v1283_v18 = vld [vmem:[#allocation2] ss:$0 sm:$0xff]  ;;  %s325_s16 = scalar_select %p324_p4, %s1124_s2, 1 }
  0x5c   : > { %824 = vmatprep.subr.bf16.mxu0 %v1056_v1  ;;  %832 = vmatprep.subr.bf16.mxu1 %v1056_v1  ;;  %v349_v8 = vsel %vm348_vm1, %v347_v6, 0.0  ;;  %s648_s10 = sshll.u32 %s311_s8, 4  ;;  %s1059_s17 = smov [#allocation8]   ;;  %s1320_s10 = int_to_ptr.vmem [resolvable:$true] %s648_s10 }
  0x5d   : > { %350 = vadd.xlane.f32.xlu0 %v349_v8  ;;  %900 = vset.pattern.permute.xlu1 %v1058_v30  ;;  %s792_s25 = sshll.u32 %s325_s16, 3  ;;  %s1318_s16 = scalar_lea.hbm %s1368_s5, %s813_s22 }
  0x5e   : > { %901 = vset.pattern.permute.xlu0 %v1058_v30  ;;  %s331_s23 = scalar_lea.vmem %s1370_s7, %s792_s25  ;;  %s327_s21 = scalar_lea.vmem %s1369_s6, %s792_s25 }
  0x5f   : > { %825 = vmatpush3.bf16.msra.mxu0 %v903_v3  ;;  %833 = vmatpush3.bf16.msra.mxu1 %v903_v3  ;;  %s627_s25 = scalar_lea.sflag [#allocation5], %s1239_s30  ;;  %s980_s2 = scalar_lea.vmem %s1320_s10, 128 }
  0x60   : > { %p981_p6 = scmp.ne.s32.totalorder %s1320_s10, %s980_s2  ;;  %s984_s13 = sshll.u32 %s1059_s17, 4  ;;  %s985_s13 = int_to_ptr.vmem [resolvable:$false] %s984_s13 }
  0x61   : > { %s986_s20 = scalar_lea.vmem %s985_s13, 256  ;;  %p987_p13 = scmp.lt.s32.totalorder %s1320_s10, %s985_s13 }
  0x62   : > { %827 = vmatmul.mubr.msk.bf16.vlgmr.msra.gmra.mrb[0].mxu0 %vm348_vm1, %v408_v7  ;;  %p982_p8 = pnand %p981_p6, %p1194_p12  ;;  %p988_p3 = scmp.lt.s32.totalorder %s986_s20, %s980_s2 }
  0x64   : > { %p983_p10 = pneg %p982_p8  ;;  %p989_p7 = por %p988_p3, %p987_p13 }
  0x66   : > { %p990_p9 = pnand %p989_p7, %p983_p10 }
  0xea   : > { %v351_v19 = vpop.xlane.xlu0 %350 }
  0xeb   : > { %v358_v20 = vadd.f32 %v1283_v18, %v351_v19 }
  0xed   : > { %v796_v21 = vmul.f32 -1.442695, %v358_v20 }
  0xef   : > { %904 = vpow2.f32 %v796_v21 }
  0xf9   : > { %v905_v22 = vpop.eup %904 }
  0xfa   : > { %v362_v23 = vadd.f32 1.0, %v905_v22 }
  0xfc   : > { %906 = vrcp.f32 %v362_v23 }
 0x106   : > { %v907_v24 = vpop.eup %906 }
 0x107   : > { %vm370_vm2 = vcmp.gt.f32.partialorder %v907_v24, 1.0  ;;  %vm374_vm3 = vcmp.le.f32.partialorder %v907_v24, 1.0 }
 0x108   : > { %v797_v25 = vsel %vm370_vm2, 1.0, %v1056_v1  ;;  %v798_v26 = vsel %vm374_vm3, 1.0, %v1056_v1 }
 0x109   : > { %v385_v27 = vadd.f32 %v798_v26, %v797_v25  ;;  %v378_v28 = vmul.f32 %v907_v24, %v798_v26 }
 0x10b   : > { %v380_v29 = vadd.f32 %v797_v25, %v378_v28  ;;  %v387_v59 = vadd.f32 1e-10, %v385_v27 }
 0x10d   : > { %vm481_vm4 = vcmp.lt.f32.partialorder %v380_v29, 1.0  ;;  %v381_v44 = vsub.f32 1.0, %v380_v29 }
 0x10e   : > { %v804_v36 = vsel %vm481_vm4, 1.0, %v1056_v1 }
 0x10f   : > { %v382_v48 = vmul.f32 %v797_v25, %v381_v44 }
 0x135   : > { %v464_v10 = vpop.f32.mrb[0].mxu0 }
 0x136   : > { %v1275_v11 = vadd.f32 %v799_v9, %v464_v10  ;;  %v828_v12 = vpop.f32.mrb[1].mxu0 }
 0x137   : > { %v467_v13 = vpop.f32.mrb[2].mxu0 }
 0x138   : > { %v524_v14 = vpack.c.bf16 %v1275_v11, %v1275_v11  ;;  %v829_v15 = vpop.f32.mrb[3].mxu0  ;;  %v470_v16 = vmul.f32 %v1262_v5, %v1275_v11 }
 0x13a   : > { %835 = vmatmul.mubr.msk.bf16.vlgmr.msra.gmra.mrb[0].mxu1 %vm348_vm1, %v524_v14  ;;  %v471_v17 = vsel %vm348_vm1, %v470_v16, 0.0 }
 0x13b   : > { %472 = vadd.xlane.f32.xlu0 %v471_v17 }
 0x151   : > { %397 = vperm.xlu0 %901, %v380_v29  }
 0x1c8   : > { %v473_v31 = vpop.xlane.xlu0 %472 }
 0x1c9   : > { %v474_v32 = vadd.f32 %v1283_v18, %v473_v31 }
 0x1cb   : > { %v803_v33 = vmul.f32 -1.442695, %v474_v32 }
 0x1cd   : > { %908 = vpow2.f32 %v803_v33 }
 0x1d0   : > { %v398_v31 = vpop.permute.xlu0 %397 }
 0x1d1   : > { %v400_v33 = vmul.f32 %v398_v31, %v1257_v4 }
 0x1d7   : > { %v909_v34 = vpop.eup %908 }
 0x1d8   : > { %v478_v35 = vadd.f32 1.0, %v909_v34 }
 0x1da   : > { %910 = vrcp.f32 %v478_v35 }
 0x1db   : > { %912 = vrcp.f32 %v387_v59 }
 0x1e4   : > { %v911_v37 = vpop.eup %910 }
 0x1e5   : > { %v484_v38 = vmul.f32 %v911_v37, %v804_v36  ;;  %v913_v62 = vpop.eup %912 }
 0x1e7   : > { %v485_v39 = vadd.f32 %v484_v38, %v380_v29 }
 0x1e9   : > { %vm486_vm5 = vcmp.gt.f32.partialorder %v485_v39, 1.0  ;;  %vm490_vm6 = vcmp.le.f32.partialorder %v485_v39, 1.0 }
 0x1ea   : > { %v806_v40 = vsel %vm490_vm6, 1.0, %v1056_v1  ;;  %v805_v42 = vsel %vm486_vm5, 1.0, %v1056_v1 }
 0x1eb   : > { %v493_v41 = vmul.f32 %v806_v40, %v804_v36  ;;  %v489_v45 = vmul.f32 %v805_v42, %v804_v36 }
 0x1ed   : > { %v494_v43 = vmul.f32 %v911_v37, %v493_v41  ;;  %v500_v60 = vadd.f32 %v493_v41, %v385_v27 }
 0x1ef   : > { %v495_v46 = vadd.f32 %v494_v43, %v380_v29  ;;  %v501_v61 = vadd.f32 %v500_v60, %v489_v45  ;;  %v502_v0 = vadd.f32 %v494_v43, %v489_v45 }
 0x1f1   : > { %v496_v47 = vadd.f32 %v495_v46, %v489_v45  ;;  %v503_v63 = vadd.f32 1e-10, %v501_v61 }
 0x1f3   : > { %v497_v49 = vsub.f32 1.0, %v496_v47  ;;  %914 = vrcp.f32 %v503_v63  ;;  %vm579_vm7 = vcmp.lt.f32.partialorder %v496_v47, 1.0 }
 0x1f4   : > { %v809_v10 = vsel %vm579_vm7, 1.0, %v1056_v1 }
 0x1f5   : > { %v498_v50 = vmul.f32 %v497_v49, %v489_v45 }
 0x1f7   : > { %v499_v51 = vadd.f32 %v498_v50, %v382_v48 }
 0x1fd   : > { %v915_v2 = vpop.eup %914 }
 0x20d   : > { %v562_v52 = vpop.f32.mrb[0].mxu1 }
 0x20e   : > { %v1292_v53 = vadd.f32 %v799_v9, %v562_v52  ;;  %v836_v54 = vpop.f32.mrb[1].mxu1 }
 0x20f   : > { %v565_v55 = vpop.f32.mrb[2].mxu1 }
 0x210   : > { %v837_v56 = vpop.f32.mrb[3].mxu1  ;;  %v568_v57 = vmul.f32 %v1262_v5, %v1292_v53 }
 0x212   : > { %v569_v58 = vsel %vm348_vm1, %v568_v57, 0.0 }
 0x213   : > { %570 = vadd.xlane.f32.xlu1 %v569_v58 }
 0x224   : > { %391 = vperm.xlu1 %900, %v385_v27  }
 0x228   : > { %404 = vperm.xlu1 %900, %v913_v62  }
 0x22c   : > { %507 = vperm.xlu1 %900, %v501_v61  }
 0x230   : > { %513 = vperm.xlu1 %900, %v502_v0  }
 0x234   : > { %520 = vperm.xlu1 %900, %v915_v2  }
 0x2a0   : > { %v571_v3 = vpop.xlane.xlu1 %570 }
 0x2a1   : > { %v572_v5 = vadd.f32 %v1283_v18, %v571_v3 }
 0x2a3   : > { %v808_v6 = vmul.f32 -1.442695, %v572_v5 }
 0x2a4   : > { %v392_v28 = vpop.permute.xlu1 %391 }
 0x2a5   : > { %916 = vpow2.f32 %v808_v6  ;;  %v394_v32 = vmul.f32 0.0, %v392_v28 }
 0x2a7   : > { %v401_v35 = vadd.f32 %v400_v33, %v394_v32 }
 0x2a8   : > { %v405_v29 = vpop.permute.xlu1 %404 }
 0x2a9   : > { %v407_v37 = vmul.f32 %v405_v29, %v401_v35 }
 0x2ac   : > { %v508_v30 = vpop.permute.xlu1 %507 }
 0x2ad   : > { %v510_v40 = vmul.f32 %v508_v30, %v407_v37 }
 0x2af   : > { %v917_v7 = vpop.eup %916 }
 0x2b0   : > { %v576_v8 = vadd.f32 1.0, %v917_v7  ;;  %v514_v34 = vpop.permute.xlu1 %513 }
 0x2b1   : > { %v516_v38 = vmul.f32 %v514_v34, %v1275_v11 }
 0x2b2   : > { %918 = vrcp.f32 %v576_v8 }
 0x2b3   : > { %v517_v41 = vadd.f32 %v516_v38, %v510_v40 }
 0x2b4   : > { %v521_v36 = vpop.permute.xlu1 %520 }
 0x2b5   : > { %v523_v43 = vmul.f32 %v521_v36, %v517_v41 }
 0x2bc   : > { %v919_v9 = vpop.eup %918 }
 0x2bd   : > { %v582_v12 = vmul.f32 %v919_v9, %v809_v10 }
 0x2bf   : > { %v583_v13 = vadd.f32 %v582_v12, %v496_v47 }
 0x2c1   : > { %vm584_vm8 = vcmp.gt.f32.partialorder %v583_v13, 1.0  ;;  %vm588_vm9 = vcmp.le.f32.partialorder %v583_v13, 1.0 }
 0x2c2   : > { %v810_v14 = vsel %vm584_vm8, 1.0, %v1056_v1  ;;  %v811_v15 = vsel %vm588_vm9, 1.0, %v1056_v1 }
 0x2c3   : > { %v591_v16 = vmul.f32 %v811_v15, %v809_v10  ;;  %v587_v17 = vmul.f32 %v810_v14, %v809_v10 }
 0x2c5   : > { %v598_v18 = vadd.f32 %v591_v16, %v501_v61  ;;  %v592_v19 = vmul.f32 %v919_v9, %v591_v16 }
 0x2c7   : > { %v599_v20 = vadd.f32 %v598_v18, %v587_v17  ;;  %v593_v21 = vadd.f32 %v592_v19, %v496_v47  ;;  %v600_v24 = vadd.f32 %v592_v19, %v587_v17 }
 0x2c9   : > { %605 = vperm.xlu1 %900, %v599_v20   ;;  %v601_v22 = vadd.f32 1e-10, %v599_v20  ;;  %625 = vst.msk [vmem:[%s331_s23] sm:$0xff] %vm623_vm10, %v599_v20  ;;  %v594_v23 = vadd.f32 %v593_v21, %v587_v17 }
 0x2cb   : > { %920 = vrcp.f32 %v601_v22  ;;  %v595_v25 = vsub.f32 1.0, %v594_v23 }
 0x2cd   : > { %611 = vperm.xlu1 %900, %v600_v24   ;;  %v596_v1 = vmul.f32 %v595_v25, %v587_v17 }
 0x2cf   : > { %v597_v26 = vadd.f32 %v596_v1, %v499_v51 }
 0x2d1   : > { %624 = vst.msk [vmem:[%s327_s21] sm:$0xff] %vm623_vm10, %v597_v26 }
 0x2d5   : > { %v921_v27 = vpop.eup %920 }
 0x2d6   : > { %618 = vperm.xlu1 %900, %v921_v27  }
 0x348   : > { %v606_v39 = vpop.permute.xlu1 %605 }
 0x349   : > { %v608_v45 = vmul.f32 %v606_v39, %v523_v43 }
 0x34c   : > { %v612_v42 = vpop.permute.xlu1 %611 }
 0x34d   : > { %v614_v44 = vmul.f32 %v612_v42, %v1292_v53 }
 0x34f   : > { %v615_v4 = vadd.f32 %v614_v44, %v608_v45 }
 0x355   : > { %v619_v46 = vpop.permute.xlu1 %618 }
 0x356   : > { %v621_v47 = vmul.f32 %v619_v46, %v615_v4 }
 0x358   : > { %622 = vst.msk [vmem:[%s311_s8] sm:$0xff] %vm348_vm1, %v621_v47 }
 0x359   : > { %993 = shalt.err (!%p990_p9)
}
 0x35a   : > { %s994_s30 = scalar_lea.hbm %s1318_s16, 128  ;;  %s998_s11 = scalar_lea.hbm %s1368_s5, 256 }
 0x35b   : > { %p995_p2 = scmp.ne.s32.totalorder %s1318_s16, %s994_s30  ;;  %p999_p11 = scmp.lt.u32.totalorder %s1318_s16, %s1368_s5 }
 0x35c   : > { %p1000_p1 = scmp.lt.u32.totalorder %s998_s11, %s994_s30  ;;  %p1002_p6 = scmp.lt.u32.totalorder %s994_s30, %s1318_s16 }
 0x35d   : > { %p996_p5 = pnand %p995_p2, %p1194_p12 }
 0x35e   : > { %p1001_p4 = por %p1000_p1, %p999_p11 }
 0x35f   : > { %p997_p0 = pneg %p996_p5 }
 0x360   : > { %p1003_p8 = por %p1002_p6, %p1001_p4 }
 0x362   : > { %p1004_p10 = pnand %p1003_p8, %p997_p0 }
 0x364   : > { %1007 = shalt.err (!%p1004_p10)
}
 0x365   : > { %844 = dma.vmem_to_hbm [thread:$0]  (%p1194_p12), %s1320_s10, 128, %s1318_s16, %s627_s25  }
 0x366 PF: > { %s666_s8 = sand.u32 1, %s1038_s26   ;;  %p1385_p13 = scmp.ne.s32.totalorder %s1375_s9, 0 }
 0x367   : > { %p1386_p3 = scmp.ge.s32.totalorder %s1050_s29, 2  ;;  %s667_s24 = scalar_lea.sflag [#allocation5], %s666_s8 }
 0x369   : > { %p855_p7 = pnand %p1386_p3, %p1385_p13 }
 0x36b   : > { %1033 = dma.done.wait (!%p855_p7), %s667_s24, 128  }
 0x36c   : > { %1035 = vsyncadd (!%p855_p7), %s667_s24, 4294967168  ;;  %p24_p9 = scmp.ge.s32.totalorder %s1159_s14, 4   ;;  %s1387_s26 = smov %s1042_s27 }
 0x36d   : > { %s1388_s27 = smov %s1046_s28  ;;  %s1389_s28 = smov %s1190_s18 }
 0x36e   : > { %s1390_s29 = smov %s1159_s14  ;;  %26 = sbr.rel (!%p24_p9) target bundleno = 9 (0x9), region = 113 }
 0x375   :  { %686 = vsyncpa [#allocation4], 1 }
 0x376   :  { %688 = vsyncpa [#allocation4 + $0x1], 1 }
 0x377   :  { %689 = vsyncpa [#allocation7], 1 }
 0x378   :  { %690 = vsyncpa [#allocation5], 1 }
 0x379   :  { %692 = vsyncpa [#allocation5 + $0x1], 1 }

</bundles_post_ra>
